<compile_context>
chip_gen: v6e
topology: v6e:2x2x1
jax: 0.10.0
libtpu: 0.0.40
codegen_flags: <defaults>
</compile_context>

<pallas_src>
import math
from functools import partial

import jax
import jax.numpy as jnp
from jax import lax
from jax.experimental import pallas as pl
from jax.experimental.pallas import tpu as pltpu


def _round_up(x, m):
    return ((x + m - 1) // m) * m


# ----------------------------- Pallas kernel --------------------------------

def _proj_ln_kernel(p_ref, w_ref, c_ref, o_ref, *, eps, inv_n):
    """Fused (patches @ W + bias) followed by LayerNorm over the real N cols.

    p_ref : (tm, K_pad)    patch rows (compute dtype, zero-padded K cols)
    w_ref : (K_pad, N_pad) flattened conv weight (zero-padded rows/cols)
    c_ref : (8, N_pad)     f32 constants: row0=bias, row1=gamma, row2=beta,
                           row3=column mask (1.0 on real cols, 0.0 on padding)
    o_ref : (tm, N_pad)    output tokens (padded cols are written as 0)
    """
    y = jnp.dot(p_ref[...], w_ref[...], preferred_element_type=jnp.float32)
    c = c_ref[...]
    bias, gamma, beta, mask = c[0:1], c[1:2], c[2:3], c[3:4]

    y = y + bias                                   # padded cols stay exactly 0
    mu = jnp.sum(y, axis=-1, keepdims=True) * inv_n
    d = (y - mu) * mask                            # zero out padded columns
    var = jnp.sum(d * d, axis=-1, keepdims=True) * inv_n
    y_hat = d * lax.rsqrt(var + eps)
    o_ref[...] = (y_hat * gamma + beta).astype(o_ref.dtype)


def _fused_proj_layernorm(patches, w_t, bias, gamma, beta, *, eps=1e-5,
                          tm=1024, compute_dtype=jnp.float32,
                          out_dtype=jnp.float32):
    """patches: (M, K), w_t: (K, N), bias/gamma/beta: (N,) -> (M, N)."""
    M, K = patches.shape
    N = w_t.shape[1]

    K_pad = _round_up(K, 128)          # aligned DMA rows, clean MXU K passes
    N_pad = _round_up(N, 128)          # lane-dense (unmasked) output stores

    # Big row tile for HBM bandwidth, but keep the parallel grid >= 2 steps
    # when possible (v7x has two TensorCores sharing the grid axis).
    half_m = max(8, _round_up(max(1, (M + 1) // 2), 8))
    tm = int(min(tm, half_m))
    M_pad = _round_up(M, tm)

    if M_pad != M or K_pad != K:
        patches = jnp.pad(patches, ((0, M_pad - M), (0, K_pad - K)))
    if K_pad != K or N_pad != N:
        w_t = jnp.pad(w_t, ((0, K_pad - K), (0, N_pad - N)))

    patches = patches.astype(compute_dtype)
    w_t = w_t.astype(compute_dtype)

    # Single (8, N_pad) constant block: bias / gamma / beta / column-mask.
    consts = jnp.zeros((8, N_pad), jnp.float32)
    consts = consts.at[0, :N].set(bias.astype(jnp.float32))
    consts = consts.at[1, :N].set(gamma.astype(jnp.float32))
    consts = consts.at[2, :N].set(beta.astype(jnp.float32))
    consts = consts.at[3, :N].set(1.0)

    grid = (M_pad // tm,)
    out = pl.pallas_call(
        partial(_proj_ln_kernel, eps=eps, inv_n=1.0 / N),
        out_shape=jax.ShapeDtypeStruct((M_pad, N_pad), out_dtype),
        grid_spec=pltpu.PrefetchScalarGridSpec(
            num_scalar_prefetch=0,
            grid=grid,
            in_specs=[
                pl.BlockSpec((tm, K_pad), lambda i: (i, 0)),     # patch rows
                pl.BlockSpec((K_pad, N_pad), lambda i: (0, 0)),  # weight (resident)
                pl.BlockSpec((8, N_pad), lambda i: (0, 0)),      # merged consts
            ],
            out_specs=pl.BlockSpec((tm, N_pad), lambda i: (i, 0)),
        ),
        compiler_params=pltpu.CompilerParams(
            dimension_semantics=("parallel",)),
    )(patches, w_t, consts)
    return out[:M, :N]


# ----------------------------- im2col (NHWC, no 6-D transpose) ---------------

def _im2col_nhwc(x_nchw, kh, kw, stride, pad_h, pad_w):
    """x: (B, C, H, W) -> patches (B*Hout*Wout, kh*kw*C), Hout, Wout.

    Gathers in NHWC order with one combined advanced-indexing gather so the
    large patch buffer never goes through a lane-shuffling transpose; the conv
    weight is re-ordered to match the (kh, kw, C) K-order instead.
    """
    B, C, H, W = x_nchw.shape
    x = jnp.transpose(x_nchw, (0, 2, 3, 1))                  # (B, H, W, C)
    x = jnp.pad(x, ((0, 0), (pad_h, pad_h), (pad_w, pad_w), (0, 0)))
    Hp, Wp = H + 2 * pad_h, W + 2 * pad_w
    Hout = (Hp - kh) // stride + 1
    Wout = (Wp - kw) // stride + 1

    hh = (jnp.arange(Hout)[:, None] * stride + jnp.arange(kh)[None, :])
    ww = (jnp.arange(Wout)[:, None] * stride + jnp.arange(kw)[None, :])
    hh = hh.reshape(Hout, 1, kh, 1)
    ww = ww.reshape(1, Wout, 1, kw)

    # Adjacent advanced indices keep position -> (B, Hout, Wout, kh, kw, C)
    g = x[:, hh, ww, :]
    patches = g.reshape(B * Hout * Wout, kh * kw * C)
    return patches, Hout, Wout


# ----------------------------- Module wrapper --------------------------------

class OverlapPatchEmbedPallas:
    """JAX/Pallas re-implementation of OverlapPatchEmbed.forward."""

    def __init__(self, img_size=16, patch_size=7, stride=4, in_chans=4,
                 embed_dim=32, key=None, dtype=jnp.float32,
                 compute_dtype=jnp.float32, tm=1024):
        self.patch_size = (patch_size, patch_size)
        self.stride = stride
        self.in_chans = in_chans
        self.embed_dim = embed_dim
        self.dtype = dtype
        self.compute_dtype = compute_dtype
        self.tm = tm

        if key is None:
            key = jax.random.PRNGKey(0)
        (k_w,) = jax.random.split(key, 1)

        # Conv2d init: weight ~ N(0, sqrt(2 / fan_out)), bias = 0.
        kh, kw = self.patch_size
        fan_out = kh * kw * embed_dim
        std = math.sqrt(2.0 / fan_out)
        # PyTorch weight layout: (out_c, in_c, kh, kw)
        self.conv_w = (std * jax.random.normal(
            k_w, (embed_dim, in_chans, kh, kw))).astype(dtype)
        self.conv_b = jnp.zeros((embed_dim,), dtype)
        # LayerNorm init: gamma = 1, beta = 0, eps = 1e-5.
        self.ln_g = jnp.ones((embed_dim,), dtype)
        self.ln_b = jnp.zeros((embed_dim,), dtype)
        self.ln_eps = 1e-5

    def __call__(self, x):
        """x: (B, C, H, W) -> (tokens (B, Hout*Wout, embed_dim), Hout, Wout)."""
        kh, kw = self.patch_size
        pad_h, pad_w = kh // 2, kw // 2
        B = x.shape[0]

        patches_2d, Hout, Wout = _im2col_nhwc(
            x, kh, kw, self.stride, pad_h, pad_w)

        # Conv weight (O, C, kh, kw) -> (kh, kw, C, O) -> (K, N) to match the
        # NHWC im2col K-order (kh, kw, C).
        K = self.in_chans * kh * kw
        w_t = jnp.transpose(self.conv_w, (2, 3, 1, 0)).reshape(K, self.embed_dim)

        tokens = _fused_proj_layernorm(
            patches_2d, w_t, self.conv_b, self.ln_g, self.ln_b,
            eps=self.ln_eps, tm=self.tm, compute_dtype=self.compute_dtype,
            out_dtype=jnp.float32)
        tokens = tokens.reshape(B, Hout * Wout, self.embed_dim)
        return tokens, Hout, Wout


# ----------------------------- Reference (plain JAX) -------------------------

def _reference_forward(module, x):
    """Plain-JAX reference: lax conv + layernorm, NCHW like PyTorch."""
    kh, kw = module.patch_size
    pad = (kh // 2, kw // 2)
    y = lax.conv_general_dilated(
        x.astype(jnp.float32), module.conv_w.astype(jnp.float32),
        window_strides=(module.stride, module.stride),
        padding=((pad[0], pad[0]), (pad[1], pad[1])),
        dimension_numbers=("NCHW", "OIHW", "NCHW"))
    y = y + module.conv_b.reshape(1, -1, 1, 1)
    B, C, H, W = y.shape
    y = y.reshape(B, C, H * W).transpose(0, 2, 1)          # (B, HW, C)
    mu = jnp.mean(y, axis=-1, keepdims=True)
    var = jnp.mean((y - mu) ** 2, axis=-1, keepdims=True)
    y = (y - mu) * lax.rsqrt(var + module.ln_eps)
    y = y * module.ln_g + module.ln_b
    return y, H, W


# ----------------------------- Main ------------------------------------------

if __name__ == "__main__":
    key = jax.random.PRNGKey(0)
    k_x, k_p = jax.random.split(key)

    # Small shapes consistent with the module: B=2, C_in=4, 16x16 image,
    # patch_size=7, stride=4, embed_dim=32  ->  Hout = Wout = 4.
    B, C_in, H, W = 2, 4, 16, 16
    x = jax.random.normal(k_x, (B, C_in, H, W), dtype=jnp.float32)

    # float32 path (exact semantics of the PyTorch module).
    module = OverlapPatchEmbedPallas(
        img_size=H, patch_size=7, stride=4, in_chans=C_in, embed_dim=32,
        key=k_p, compute_dtype=jnp.float32)
    tokens, Hout, Wout = module(x)
    tokens = jax.block_until_ready(tokens)

    ref, Href, Wref = _reference_forward(module, x)
    ref = jax.block_until_ready(ref)
    assert (Hout, Wout) == (Href, Wref)
    assert tokens.shape == (B, Hout * Wout, module.embed_dim)
    assert jnp.allclose(tokens, ref, atol=1e-4, rtol=1e-4)

    # bf16-compute path (halves HBM read traffic); matmul accumulation and all
    # LayerNorm math stay in float32, so only input/weight quantization error
    # remains -> loose tolerance to avoid flaky comparisons.
    module_bf16 = OverlapPatchEmbedPallas(
        img_size=H, patch_size=7, stride=4, in_chans=C_in, embed_dim=32,
        key=k_p, compute_dtype=jnp.bfloat16)
    tokens_bf16, _, _ = module_bf16(x)
    tokens_bf16 = jax.block_until_ready(tokens_bf16)
    assert jnp.allclose(tokens_bf16, ref, atol=1e-1, rtol=1e-1)

    print("KERNEL_OK")
</pallas_src>

<mosaic_0001>
module attributes {stable_mosaic.version = 11 : i64} {
  func.func @_proj_ln_kernel(%arg0: i32, %arg1: memref<16x256xf32, #tpu.memory_space<vmem>>, %arg2: memref<256x128xf32, #tpu.memory_space<vmem>>, %arg3: memref<8x128xf32, #tpu.memory_space<vmem>>, %arg4: memref<16x128xf32, #tpu.memory_space<vmem>>) attributes {dimension_semantics = [#tpu.dimension_semantics<parallel>], iteration_bounds = array<i64: 2>, scalar_prefetch = 0 : i64, scratch_operands = 0 : i64, tpu.core_type = #tpu.core_type<tc>, window_params = [{transform_indices = @transform_0, window_bounds = array<i64: 16, 256>}, {pipeline_mode = #tpu.pipeline_mode<synchronous>, transform_indices = @transform_1, window_bounds = array<i64: 256, 128>}, {pipeline_mode = #tpu.pipeline_mode<synchronous>, transform_indices = @transform_2, window_bounds = array<i64: 8, 128>}, {transform_indices = @transform_3, window_bounds = array<i64: 16, 128>}]} {
    %c0 = arith.constant 0 : index
    %c0_0 = arith.constant 0 : index
    %0 = vector.load %arg1[%c0, %c0_0] : memref<16x256xf32, #tpu.memory_space<vmem>>, vector<16x256xf32>
    %c0_1 = arith.constant 0 : index
    %c0_2 = arith.constant 0 : index
    %1 = vector.load %arg2[%c0_1, %c0_2] : memref<256x128xf32, #tpu.memory_space<vmem>>, vector<256x128xf32>
    %cst = arith.constant dense<0.000000e+00> : vector<16x128xf32>
    %2 = tpu.matmul %0, %1, %cst {dimension_numbers = #tpu.dot_dimension_numbers<[1], [0], [0], [1], [0, 0, 1, 1], [], []>} : vector<16x256xf32>, vector<256x128xf32>, vector<16x128xf32> -> vector<16x128xf32>
    %c0_3 = arith.constant 0 : index
    %c0_4 = arith.constant 0 : index
    %3 = vector.load %arg3[%c0_3, %c0_4] : memref<8x128xf32, #tpu.memory_space<vmem>>, vector<8x128xf32>
    %4 = vector.extract_strided_slice %3 {offsets = [0, 0], sizes = [1, 128], strides = [1, 1]} : vector<8x128xf32> to vector<1x128xf32>
    %5 = vector.extract_strided_slice %3 {offsets = [1, 0], sizes = [1, 128], strides = [1, 1]} : vector<8x128xf32> to vector<1x128xf32>
    %6 = vector.extract_strided_slice %3 {offsets = [2, 0], sizes = [1, 128], strides = [1, 1]} : vector<8x128xf32> to vector<1x128xf32>
    %7 = vector.extract_strided_slice %3 {offsets = [3, 0], sizes = [1, 128], strides = [1, 1]} : vector<8x128xf32> to vector<1x128xf32>
    %8 = vector.broadcast %4 : vector<1x128xf32> to vector<16x128xf32>
    %9 = arith.addf %2, %8 : vector<16x128xf32>
    %cst_5 = arith.constant dense<0.000000e+00> : vector<16xf32>
    %10 = vector.multi_reduction <add>, %9, %cst_5 [1] : vector<16x128xf32> to vector<16xf32>
    %11 = vector.shape_cast %10 : vector<16xf32> to vector<16x1xf32>
    %cst_6 = arith.constant 3.125000e-02 : f32
    %12 = vector.broadcast %cst_6 : f32 to vector<16x1xf32>
    %13 = arith.mulf %11, %12 : vector<16x1xf32>
    %14 = vector.broadcast %13 : vector<16x1xf32> to vector<16x128xf32>
    %15 = arith.subf %9, %14 : vector<16x128xf32>
    %16 = vector.broadcast %7 : vector<1x128xf32> to vector<16x128xf32>
    %17 = arith.mulf %15, %16 : vector<16x128xf32>
    %18 = arith.mulf %17, %17 : vector<16x128xf32>
    %cst_7 = arith.constant dense<0.000000e+00> : vector<16xf32>
    %19 = vector.multi_reduction <add>, %18, %cst_7 [1] : vector<16x128xf32> to vector<16xf32>
    %20 = vector.shape_cast %19 : vector<16xf32> to vector<16x1xf32>
    %cst_8 = arith.constant 3.125000e-02 : f32
    %21 = vector.broadcast %cst_8 : f32 to vector<16x1xf32>
    %22 = arith.mulf %20, %21 : vector<16x1xf32>
    %cst_9 = arith.constant 9.99999974E-6 : f32
    %23 = vector.broadcast %cst_9 : f32 to vector<16x1xf32>
    %24 = arith.addf %22, %23 : vector<16x1xf32>
    %25 = math.rsqrt %24 : vector<16x1xf32>
    %26 = vector.broadcast %25 : vector<16x1xf32> to vector<16x128xf32>
    %27 = arith.mulf %17, %26 : vector<16x128xf32>
    %28 = vector.broadcast %5 : vector<1x128xf32> to vector<16x128xf32>
    %29 = arith.mulf %27, %28 : vector<16x128xf32>
    %30 = vector.broadcast %6 : vector<1x128xf32> to vector<16x128xf32>
    %31 = arith.addf %29, %30 : vector<16x128xf32>
    %c0_10 = arith.constant 0 : index
    %c0_11 = arith.constant 0 : index
    %32 = vector.load %arg4[%c0_10, %c0_11] : memref<16x128xf32, #tpu.memory_space<vmem>>, vector<16x128xf32>
    tpu.vector_store %arg4[%c0_10, %c0_11], %31 {strides = array<i32>} : memref<16x128xf32, #tpu.memory_space<vmem>>, vector<16x128xf32>,
    return
  }
  func.func @transform_0(%arg0: i32) -> (i32, i32) {
    %c0_i32 = arith.constant 0 : i32
    %c0_i32_0 = arith.constant 0 : i32
    return %arg0, %c0_i32 : i32, i32
  }
  func.func @transform_1(%arg0: i32) -> (i32, i32) {
    %c0_i32 = arith.constant 0 : i32
    %c0_i32_0 = arith.constant 0 : i32
    %c0_i32_1 = arith.constant 0 : i32
    return %c0_i32, %c0_i32_0 : i32, i32
  }
  func.func @transform_2(%arg0: i32) -> (i32, i32) {
    %c0_i32 = arith.constant 0 : i32
    %c0_i32_0 = arith.constant 0 : i32
    %c0_i32_1 = arith.constant 0 : i32
    return %c0_i32, %c0_i32_0 : i32, i32
  }
  func.func @transform_3(%arg0: i32) -> (i32, i32) {
    %c0_i32 = arith.constant 0 : i32
    %c0_i32_0 = arith.constant 0 : i32
    return %arg0, %c0_i32 : i32, i32
  }
}

</mosaic_0001>

<bundles_post_ra>
// kernel: tpu_custom_call.1
= control target key start
LH: loop header
LB: loop body
LE: loop exit
PB: predicated region body
PF: predicated region fallthrough
CT: control target
= control target key end

     0   :  { %8 = vsyncpa [#allocation3], 0  ;;  %s1027_s0 = inlined_call_operand.hbm [shape: f32[32,256], index: 0, kind: input, shape index: {}]   ;;  %s1028_s1 = inlined_call_operand.hbm [shape: f32[256,128], index: 1, kind: input, shape index: {}]   ;;  %s1029_s2 = inlined_call_operand.hbm [shape: f32[8,128], index: 2, kind: input, shape index: {}]   ;;  %s1030_s3 = inlined_call_operand.hbm [shape: f32[32,128], index: 3, kind: output, shape index: {}]  }
   0x1   :  { %10 = vsyncpa [#allocation3 + $0x1], 0 }
   0x2   :  { %11 = vsyncpa [#allocation6], 0 }
   0x3   :  { %12 = vsyncpa [#allocation4], 0 }
   0x4   :  { %14 = vsyncpa [#allocation4 + $0x1], 0  ;;  %s832_s12 = smov 0   ;;  %s834_s13 = smov 0  }
   0x5   :  { %s836_s14 = smov 0   ;;  %s838_s15 = smov 0  }
   0x6 LB: > { %s853_s16 = sadd.s32 4294967295, %s800_s15   ;;  %s483_s17 = sadd.s32 4294967294, %s800_s15   ;;  %s800_s15 = sphi %s838_s15, %s1052_s15   ;;  %s796_s14 = sphi %s836_s14, %s1051_s14   ;;  %s792_s13 = sphi %s834_s13, %s1050_s13   ;;  %s788_s12 = sphi %s832_s12, %s1049_s12  }
   0x7   : > { %p40_p0 = scmp.ne.s32.totalorder %s792_s13, %s788_s12  ;;  %p1031_p1 = scmp.eq.s32.totalorder %s853_s16, 0 }
   0x8   : > { %p112_p3 = scmp.eq.s32.totalorder %s483_s17, 1  ;;  %p484_p5 = scmp.ge.s32.totalorder %s800_s15, 1 }
   0x9   : > { %p862_p4 = por %p1031_p1, %p40_p0  ;;  %p119_p7 = scmp.lt.s32.totalorder %s800_s15, 3 }
   0xa   : > { %p867_p6 = por %p112_p3, %p40_p0  ;;  %s802_s21 = smov [#allocation5]  }
   0xb   : > { %s1035_s18 = scalar_select %p862_p4, 1, 0 }
   0xc   : > { %s1036_s19 = scalar_select %p867_p6, 1, 0 }
   0xd   : > { %p872_p8 = pnand %p484_p5, %p119_p7  ;;  %s131_s22 = sshll.u32 %s802_s21, 4  ;;  %s132_s22 = int_to_ptr.vmem [resolvable:$true] %s131_s22 }
   0xe   : > { %s803_s24 = smov [#allocation7]   ;;  %s663_s26 = scalar_lea.vmem %s132_s22, 4096 }
   0xf   : > { %s1037_s20 = scalar_select %p872_p8, 1, 0 }
  0x10   : > { %p587_p9 = pneg %p872_p8  ;;  %s145_s25 = sshll.u32 %s803_s24, 4  ;;  %s146_s25 = int_to_ptr.vmem [resolvable:$true] %s145_s25 }
  0x11   : > { %p664_p13 = scmp.ne.s32.totalorder %s132_s22, %s663_s26  ;;  %p671_p5 = scmp.lt.s32.totalorder %s132_s22, %s132_s22 }
  0x12   : > { %p881_p11 = pnand %p587_p9, %p1031_p1  ;;  %p672_p7 = scmp.lt.s32.totalorder %s663_s26, %s663_s26 }
  0x14   : > { %p654_p12 = pneg %p881_p11  ;;  %p673_p10 = por %p672_p7, %p671_p5 }
  0x16   : > { %p666_p0 = pnand %p664_p13, %p654_p12 }
  0x18   : > { %p667_p3 = pneg %p666_p0 }
  0x1a   : > { %p674_p9 = pnand %p673_p10, %p667_p3 }
  0x1c   : > { %677 = shalt.err (!%p674_p9)
}
  0x1d   : > { %s804_s27 = smov 128   ;;  %s805_s28 = smov 8  }
  0x1e   : > { %590 = dma.hbm_to_vmem [thread:$0]  (!%p881_p11), %s1028_s1, 4096, %s132_s22, [#allocation6], %s804_s27, %s804_s27, %s805_s28  }
  0x1f   : > { %s689_s4 = scalar_lea.vmem %s146_s25, 128  ;;  %p697_p2 = scmp.lt.s32.totalorder %s146_s25, %s146_s25 }
  0x20   : > { %p690_p1 = scmp.ne.s32.totalorder %s146_s25, %s689_s4  ;;  %p698_p6 = scmp.lt.s32.totalorder %s689_s4, %s689_s4 }
  0x22   : > { %p692_p13 = pnand %p690_p1, %p654_p12  ;;  %p699_p5 = por %p698_p6, %p697_p2 }
  0x24   : > { %p693_p0 = pneg %p692_p13 }
  0x26   : > { %p700_p10 = pnand %p699_p5, %p693_p0 }
  0x28   : > { %703 = shalt.err (!%p700_p10)
}
  0x29   : > { %593 = dma.hbm_to_vmem [thread:$0]  (!%p881_p11), %s1029_s2, 128, %s146_s25, [#allocation6]  }
  0x2a   : > { %s904_s7 = sadd.s32 1, %s800_s15   ;;  %s27_s8 = sadd.s32 1, %s796_s14 }
  0x2b   : > { %s24_s9 = ssub.s32 %s800_s15, %s904_s7  ;;  %p34_p1 = scmp.ne.s32.totalorder %s796_s14, %s792_s13 }
  0x2c   : > { %p25_p2 = scmp.eq.s32.totalorder %s24_s9, 0  ;;  %p35_p6 = scmp.eq.s32.totalorder %s800_s15, 0 }
  0x2d   : > { %p1039_p12 = scmp.eq.s32.totalorder %s853_s16, 1  ;;  %p604_p7 = scmp.lt.s32.totalorder %s800_s15, 2 }
  0x2e   : > { %s920_s11 = scalar_select %p25_p2, %s796_s14, %s27_s8  }
  0x2f   : > { %p914_p3 = por %p1039_p12, %p34_p1  ;;  %p36_p9 = por %p35_p6, %p34_p1 }
  0x30   : > { %s156_s17 = sand.u32 1, %s796_s14   ;;  %s503_s22 = sshll.u32 %s800_s15, 9 }
  0x31   : > { %s1040_s10 = scalar_select %p914_p3, 1, 0 }
  0x32   : > { %s488_s21 = sshll.u32 %s156_s17, 5  ;;  %s927_s25 = scalar_lea.hbm %s1027_s0, %s503_s22 }
  0x33   : > { %s160_s26 = scalar_lea.vmem [#allocation2], %s488_s21  ;;  %p931_p11 = pnand %p604_p7, %p36_p9 }
  0x34   : > { %s168_s27 = sshll.u32 %s160_s26, 4  ;;  %s935_s29 = scalar_lea.sflag [#allocation3], %s156_s17  ;;  %s929_s27 = int_to_ptr.vmem [resolvable:$true] %s168_s27 }
  0x35   : > { %s704_s30 = scalar_lea.hbm %s927_s25, 512  ;;  %p706_p0 = pneg %p931_p11 }
  0x36   : > { %p705_p13 = scmp.ne.s32.totalorder %s927_s25, %s704_s30  ;;  %s709_s6 = scalar_lea.hbm %s1027_s0, 1024 }
  0x37   : > { %p710_p1 = scmp.lt.s32.totalorder %s927_s25, %s1027_s0  ;;  %p711_p2 = scmp.lt.s32.totalorder %s709_s6, %s704_s30 }
  0x38   : > { %p707_p5 = pnand %p706_p0, %p705_p13 }
  0x39   : > { %p712_p6 = por %p711_p2, %p710_p1 }
  0x3a   : > { %p708_p10 = pneg %p707_p5 }
  0x3c   : > { %p713_p12 = pnand %p712_p6, %p708_p10 }
  0x3e   : > { %716 = shalt.err (!%p713_p12)
}
  0x3f   : > { %s717_s17 = scalar_lea.vmem %s929_s27, 512  ;;  %s806_s21 = smov [#allocation2]  }
  0x40   : > { %p718_p7 = scmp.ne.s32.totalorder %s929_s27, %s717_s17  ;;  %s722_s22 = sshll.u32 %s806_s21, 4  ;;  %s723_s22 = int_to_ptr.vmem [resolvable:$false] %s722_s22 }
  0x41   : > { %s724_s23 = scalar_lea.vmem %s723_s22, 1024  ;;  %p725_p5 = scmp.lt.s32.totalorder %s929_s27, %s723_s22 }
  0x42   : > { %p720_p9 = pnand %p718_p7, %p706_p0  ;;  %p726_p3 = scmp.lt.s32.totalorder %s724_s23, %s717_s17 }
  0x44   : > { %p721_p13 = pneg %p720_p9  ;;  %p727_p4 = por %p726_p3, %p725_p5 }
  0x46   : > { %p728_p8 = pnand %p727_p4, %p721_p13 }
  0x48   : > { %731 = shalt.err (!%p728_p8)
}
  0x49   : > { %s807_s24 = smov 256   ;;  %s808_s26 = smov 16  }
  0x4a   : > { %597 = dma.hbm_to_vmem [thread:$0]  (!%p931_p11), %s927_s25, 512, %s929_s27, %s935_s29, %s807_s24, %s807_s24, %s808_s26  }
  0x4b   : > { %p1042_p0 = scmp.ne.s32.totalorder %s1037_s20, 0 }
  0x4c   : > { %s959_s30 = sand.u32 (!%p1042_p0), 1, %s792_s13   ;;  %p1043_p4 = scmp.ne.s32.totalorder (!%p1042_p0), %s1035_s18, 0 }
  0x4d   : > { %180 = sbr.rel (%p1042_p0) target bundleno = 644 (0x284), region = 32  ;;  %s493_s4 = sshll.u32 (!%p1042_p0), %s959_s30, 5 }
  0x4e   : > { %s183_s5 = scalar_lea.sflag (!%p1042_p0), [#allocation3], %s959_s30  ;;  %s963_s6 = scalar_lea.vmem (!%p1042_p0), [#allocation2], %s493_s4 }
  0x52   : > { %775 = dma.done.wait (%p1043_p4), %s183_s5, 512  }
  0x53   : > { %777 = vsyncadd (%p1043_p4), %s183_s5, 4294966784  ;;  %p1044_p8 = scmp.eq.s32.totalorder %s853_s16, 0 }
  0x55   : > { %779 = dma.done.wait (%p1044_p8), [#allocation6], 4224   ;;  %p1045_p3 = pmov %p1044_p8 }
  0x56   : > { %v254_v0 = vld [vmem:[#allocation5 + $0xf8] sm:$0xff]  ;;  %v253_v2 = vld [vmem:[#allocation5 + $0xf0] sm:$0xff]  ;;  %v252_v4 = vld [vmem:[#allocation5 + $0xe8] sm:$0xff]  ;;  %v256_v36 = vlaneseq  ;;  %s496_s18 = sshll.u32 %s959_s30, 4  ;;  %s504_s20 = sshll.u32 %s853_s16, 8 }
  0x57   : > { %781 = vsyncadd (%p1045_p3), [#allocation6], 4294963072  ;;  %v238_v1 = vld [vmem:[#allocation5 + $0x78] sm:$0xff]  ;;  %505 = vmatprep.subr.mxu0 %v254_v0  ;;  %543 = vmatprep.subr.mxu1 %v254_v0  ;;  %v237_v3 = vld [vmem:[#allocation5 + $0x70] sm:$0xff]  ;;  %s216_s25 = scalar_lea.vmem [#allocation8], %s496_s18  ;;  %s982_s8 = scalar_lea.hbm %s1030_s3, %s504_s20 }
  0x58   : > { %506 = vmatpush3.msra.mxu0 %v238_v1  ;;  %559 = vmatpush3.msra.mxu1 %v238_v1  ;;  %v236_v5 = vld [vmem:[#allocation5 + $0x68] sm:$0xff]  ;;  %v251_v6 = vld [vmem:[#allocation5 + $0xe0] sm:$0xff]  ;;  %v250_v8 = vld [vmem:[#allocation5 + $0xd8] sm:$0xff]  ;;  %v257_v37 = vshrl.u32 %v256_v36, 7  ;;  %s391_s27 = sshll.u32 %s216_s25, 4  ;;  %s378_s9 = scalar_lea.sflag [#allocation4], %s959_s30  ;;  %s984_s27 = int_to_ptr.vmem [resolvable:$true] %s391_s27 }
  0x59   : > { %507 = vmatprep.subr.mxu0 %v253_v2  ;;  %544 = vmatprep.subr.mxu1 %v253_v2  ;;  %v235_v7 = vld [vmem:[#allocation5 + $0x60] sm:$0xff]  ;;  %v234_v9 = vld [vmem:[#allocation5 + $0x58] sm:$0xff]  ;;  %v249_v10 = vld [vmem:[#allocation5 + $0xd0] sm:$0xff]  ;;  %s732_s17 = scalar_lea.vmem %s984_s27, 256  ;;  %p1046_p10 = scmp.ne.s32.totalorder %s1040_s10, 0 }
  0x5a   : > { %508 = vmatpush3.msra.mxu0 %v237_v3  ;;  %560 = vmatpush3.msra.mxu1 %v237_v3  ;;  %v233_v11 = vld [vmem:[#allocation5 + $0x50] sm:$0xff]  ;;  %v248_v12 = vld [vmem:[#allocation5 + $0xc8] sm:$0xff]  ;;  %v247_v14 = vld [vmem:[#allocation5 + $0xc0] sm:$0xff]  ;;  %v258_v38 = vsub.s32 0, %v257_v37  ;;  %v345_v49 = vsub.s32 3, %v257_v37  ;;  %v365_v3 = vsub.s32 1, %v257_v37  ;;  %p733_p11 = scmp.ne.s32.totalorder %s984_s27, %s732_s17 }
  0x5b   : > { %509 = vmatprep.subr.mxu0 %v252_v4  ;;  %545 = vmatprep.subr.mxu1 %v252_v4  ;;  %v232_v13 = vld [vmem:[#allocation5 + $0x48] sm:$0xff]  ;;  %v231_v15 = vld [vmem:[#allocation5 + $0x40] sm:$0xff]  ;;  %v246_v16 = vld [vmem:[#allocation5 + $0xb8] sm:$0xff]  ;;  %v371_v4 = vsub.s32 2, %v257_v37  ;;  %s809_s16 = smov [#allocation8]  }
  0x5c   : > { %510 = vmatpush3.msra.mxu0 %v236_v5  ;;  %561 = vmatpush3.msra.mxu1 %v236_v5  ;;  %v230_v17 = vld [vmem:[#allocation5 + $0x38] sm:$0xff]  ;;  %v245_v18 = vld [vmem:[#allocation5 + $0xb0] sm:$0xff]  ;;  %v244_v20 = vld [vmem:[#allocation5 + $0xa8] sm:$0xff]  ;;  %p734_p1 = pnand %p733_p11, %p1046_p10  ;;  %s736_s21 = sshll.u32 %s809_s16, 4  ;;  %s737_s21 = int_to_ptr.vmem [resolvable:$false] %s736_s21 }
  0x5d   : > { %511 = vmatprep.subr.mxu0 %v251_v6  ;;  %546 = vmatprep.subr.mxu1 %v251_v6  ;;  %v229_v19 = vld [vmem:[#allocation5 + $0x30] sm:$0xff]  ;;  %v228_v21 = vld [vmem:[#allocation5 + $0x28] sm:$0xff]  ;;  %v243_v22 = vld [vmem:[#allocation5 + $0xa0] sm:$0xff]  ;;  %s738_s22 = scalar_lea.vmem %s737_s21, 512  ;;  %p739_p6 = scmp.lt.s32.totalorder %s984_s27, %s737_s21 }
  0x5e   : > { %512 = vmatpush3.msra.mxu0 %v235_v7  ;;  %562 = vmatpush3.msra.mxu1 %v235_v7  ;;  %v227_v23 = vld [vmem:[#allocation5 + $0x20] sm:$0xff]  ;;  %v242_v24 = vld [vmem:[#allocation5 + $0x98] sm:$0xff]  ;;  %v241_v26 = vld [vmem:[#allocation5 + $0x90] sm:$0xff]  ;;  %p735_p2 = pneg %p734_p1  ;;  %p740_p12 = scmp.lt.s32.totalorder %s738_s22, %s732_s17 }
  0x5f   : > { %513 = vmatprep.subr.mxu0 %v250_v8  ;;  %547 = vmatprep.subr.mxu1 %v250_v8  ;;  %v226_v25 = vld [vmem:[#allocation5 + $0x18] sm:$0xff]  ;;  %v225_v27 = vld [vmem:[#allocation5 + $0x10] sm:$0xff]  ;;  %v240_v28 = vld [vmem:[#allocation5 + $0x88] sm:$0xff] }
  0x60   : > { %514 = vmatpush3.msra.mxu0 %v234_v9  ;;  %563 = vmatpush3.msra.mxu1 %v234_v9  ;;  %v224_v29 = vld [vmem:[#allocation5 + $0x8] sm:$0xff]  ;;  %v239_v30 = vld [vmem:[#allocation5 + $0x80] sm:$0xff]  ;;  %v222_v34 = vld [vmem:[%s963_s6 + $0x18] sm:$0xff]  ;;  %p741_p7 = por %p740_p12, %p739_p6 }
  0x61   : > { %515 = vmatprep.subr.mxu0 %v249_v10  ;;  %548 = vmatprep.subr.mxu1 %v249_v10  ;;  %v220_v31 = vld [vmem:[%s963_s6 + $0x8] sm:$0xff]  ;;  %v223_v32 = vld [vmem:[#allocation5] sm:$0xff]  ;;  %v221_v35 = vld [vmem:[%s963_s6 + $0x10] sm:$0xff] }
  0x62   : > { %516 = vmatpush3.msra.mxu0 %v233_v11  ;;  %564 = vmatpush3.msra.mxu1 %v233_v11  ;;  %v219_v33 = vld [vmem:[%s963_s6] sm:$0xff]  ;;  %p742_p9 = pnand %p741_p7, %p735_p2 }
  0x63   : > { %517 = vmatprep.subr.mxu0 %v248_v12  ;;  %549 = vmatprep.subr.mxu1 %v248_v12  ;;  %v255_v39 = vld [vmem:[#allocation7] sm:$0xff] }
  0x64   : > { %518 = vmatpush3.msra.mxu0 %v232_v13  ;;  %565 = vmatpush3.msra.mxu1 %v232_v13  ;;  %v259_v41 = vrot.slane %v255_v39, %v258_v38  ;;  %v346_v52 = vrot.slane %v255_v39, %v345_v49  ;;  %v366_v5 = vrot.slane %v255_v39, %v365_v3 }
  0x65   : > { %519 = vmatprep.subr.mxu0 %v247_v14  ;;  %550 = vmatprep.subr.mxu1 %v247_v14  ;;  %v372_v7 = vrot.slane %v255_v39, %v371_v4 }
  0x66   : > { %520 = vmatpush3.msra.mxu0 %v231_v15  ;;  %566 = vmatpush3.msra.mxu1 %v231_v15 }
  0x67   : > { %521 = vmatprep.subr.mxu0 %v246_v16  ;;  %551 = vmatprep.subr.mxu1 %v246_v16 }
  0x68   : > { %522 = vmatpush3.msra.mxu0 %v230_v17  ;;  %567 = vmatpush3.msra.mxu1 %v230_v17 }
  0x69   : > { %523 = vmatprep.subr.mxu0 %v245_v18  ;;  %552 = vmatprep.subr.mxu1 %v245_v18 }
  0x6a   : > { %524 = vmatpush3.msra.mxu0 %v229_v19  ;;  %568 = vmatpush3.msra.mxu1 %v229_v19 }
  0x6b   : > { %525 = vmatprep.subr.mxu0 %v244_v20  ;;  %553 = vmatprep.subr.mxu1 %v244_v20 }
  0x6c   : > { %526 = vmatpush3.msra.mxu0 %v228_v21  ;;  %569 = vmatpush3.msra.mxu1 %v228_v21 }
  0x6d   : > { %527 = vmatprep.subr.mxu0 %v243_v22  ;;  %554 = vmatprep.subr.mxu1 %v243_v22 }
  0x6e   : > { %528 = vmatpush3.msra.mxu0 %v227_v23  ;;  %570 = vmatpush3.msra.mxu1 %v227_v23 }
  0x6f   : > { %529 = vmatprep.subr.mxu0 %v242_v24  ;;  %555 = vmatprep.subr.mxu1 %v242_v24 }
  0x70   : > { %530 = vmatpush3.msra.mxu0 %v226_v25  ;;  %571 = vmatpush3.msra.mxu1 %v226_v25 }
  0x71   : > { %531 = vmatprep.subr.mxu0 %v241_v26  ;;  %556 = vmatprep.subr.mxu1 %v241_v26 }
  0x72   : > { %532 = vmatpush3.msra.mxu0 %v225_v27  ;;  %572 = vmatpush3.msra.mxu1 %v225_v27 }
  0x73   : > { %533 = vmatprep.subr.mxu0 %v240_v28  ;;  %557 = vmatprep.subr.mxu1 %v240_v28 }
  0x74   : > { %534 = vmatpush3.msra.mxu0 %v224_v29  ;;  %573 = vmatpush3.msra.mxu1 %v224_v29 }
  0x75   : > { %535 = vmatprep.subr.mxu0 %v239_v30  ;;  %324 = vmatprep.mubr.f32.mxu0 %v220_v31 }
  0x76   : > { %536 = vmatpush3.msra.mxu0 %v223_v32  ;;  %558 = vmatprep.subr.mxu1 %v239_v30 }
  0x77   : > { %325 = vmatmul.mubr.f32.vlgmr.msra.gmra.mxu0 %v219_v33  ;;  %574 = vmatpush3.msra.mxu1 %v223_v32 }
  0x78   : > { %329 = vmatprep.mubr.f32.mxu1 %v222_v34 }
  0x79   : > { %330 = vmatmul.mubr.f32.vlgmr.msra.gmra.mxu1 %v221_v35 }
 0x137   : > { %v537_v40 = vpop.f32.mrf.mxu0 }
 0x139   : > { %v538_v42 = vpop.f32.mrf.mxu0  ;;  %v540_v43 = vpop.f32.mrf.mxu1 }
 0x13a   : > { %v539_v44 = vadd.f32 %v538_v42, %v537_v40 }
 0x13b   : > { %v541_v45 = vpop.f32.mrf.mxu1 }
 0x13c   : > { %v542_v46 = vadd.f32 %v541_v45, %v540_v43  ;;  %v327_v47 = vadd.f32 %v539_v44, %v259_v41 }
 0x13e   : > { %335 = vadd.xlane.f32.xlu0 %v327_v47  ;;  %v332_v48 = vadd.f32 %v542_v46, %v259_v41 }
 0x142   : > { %337 = vadd.xlane.f32.xlu0 %v332_v48 }
 0x1c7   : > { %v336_v50 = vpop.xlane.xlu0 %335 }
 0x1c8   : > { %v339_v51 = vmul.f32 0.03125, %v336_v50 }
 0x1ca   : > { %v341_v53 = vsub.f32 %v327_v47, %v339_v51 }
 0x1cb   : > { %v338_v54 = vpop.xlane.xlu0 %337 }
 0x1cc   : > { %v340_v55 = vmul.f32 0.03125, %v338_v54  ;;  %v347_v56 = vmul.f32 %v346_v52, %v341_v53 }
 0x1ce   : > { %v342_v57 = vsub.f32 %v332_v48, %v340_v55  ;;  %v349_v58 = vmul.f32 %v347_v56, %v347_v56 }
 0x1d0   : > { %351 = vadd.xlane.f32.xlu1 %v349_v58  ;;  %v348_v59 = vmul.f32 %v346_v52, %v342_v57 }
 0x1d2   : > { %v350_v60 = vmul.f32 %v348_v59, %v348_v59 }
 0x1d4   : > { %353 = vadd.xlane.f32.xlu1 %v350_v60 }
 0x259   : > { %v352_v61 = vpop.xlane.xlu1 %351 }
 0x25a   : > { %v355_v62 = vmul.f32 0.03125, %v352_v61 }
 0x25c   : > { %v357_v63 = vadd.f32 1e-05, %v355_v62 }
 0x25d   : > { %v354_v0 = vpop.xlane.xlu1 %353 }
 0x25e   : > { %648 = vrsqrt.f32 %v357_v63  ;;  %v356_v1 = vmul.f32 0.03125, %v354_v0 }
 0x260   : > { %v358_v2 = vadd.f32 1e-05, %v356_v1 }
 0x262   : > { %650 = vrsqrt.f32 %v358_v2 }
 0x26b   : > { %v649_v6 = vpop.eup %648 }
 0x26c   : > { %v361_v8 = vmul.f32 %v649_v6, %v347_v56 }
 0x26e   : > { %v367_v9 = vmul.f32 %v366_v5, %v361_v8 }
 0x26f   : > { %v651_v10 = vpop.eup %650 }
 0x270   : > { %v373_v11 = vadd.f32 %v372_v7, %v367_v9  ;;  %v362_v12 = vmul.f32 %v651_v10, %v348_v59 }
 0x272   : > { %v368_v13 = vmul.f32 %v366_v5, %v362_v12  ;;  %375 = vst [vmem:[%s216_s25] sm:$0xff] %v373_v11 }
 0x274   : > { %v374_v14 = vadd.f32 %v372_v7, %v368_v13 }
 0x276   : > { %376 = vst [vmem:[%s216_s25 + $0x8] sm:$0xff] %v374_v14 }
 0x277   : > { %745 = shalt.err (!%p742_p9)
}
 0x278   : > { %s746_s23 = scalar_lea.hbm %s982_s8, 256  ;;  %s750_s4 = scalar_lea.hbm %s1030_s3, 512 }
 0x279   : > { %p747_p13 = scmp.ne.s32.totalorder %s982_s8, %s746_s23  ;;  %p751_p4 = scmp.lt.s32.totalorder %s982_s8, %s1030_s3 }
 0x27a   : > { %p752_p8 = scmp.lt.s32.totalorder %s750_s4, %s746_s23 }
 0x27b   : > { %p748_p5 = pnand %p747_p13, %p1046_p10 }
 0x27c   : > { %p753_p3 = por %p752_p8, %p751_p4 }
 0x27d   : > { %p749_p0 = pneg %p748_p5 }
 0x27f   : > { %p754_p11 = pnand %p753_p3, %p749_p0 }
 0x281   : > { %757 = shalt.err (!%p754_p11)
}
 0x282   : > { %s810_s18 = smov 128   ;;  %s811_s20 = smov 8  }
 0x283   : > { %585 = dma.vmem_to_hbm [thread:$0]  (%p1046_p10), %s984_s27, 256, %s982_s8, %s378_s9, %s810_s18, %s810_s18, %s811_s20  }
 0x284 PF: > { %s406_s25 = sand.u32 1, %s788_s12   ;;  %p1047_p1 = scmp.ne.s32.totalorder %s1036_s19, 0 }
 0x285   : > { %p1048_p2 = scmp.ge.s32.totalorder %s800_s15, 2  ;;  %s407_s28 = scalar_lea.sflag [#allocation4], %s406_s25 }
 0x287   : > { %p599_p6 = pnand %p1048_p2, %p1047_p1 }
 0x289   : > { %p600_p12 = pneg %p599_p6 }
 0x28b   : > { %783 = dma.done.wait (%p600_p12), %s407_s28, 256  }
 0x28c   : > { %785 = vsyncadd (%p600_p12), %s407_s28, 4294967040  ;;  %p17_p7 = scmp.ge.s32.totalorder %s904_s7, 4   ;;  %s1049_s12 = smov %s792_s13 }
 0x28d   : > { %s1050_s13 = smov %s796_s14  ;;  %s1051_s14 = smov %s920_s11 }
 0x28e   : > { %s1052_s15 = smov %s904_s7  ;;  %19 = sbr.rel (!%p17_p7) target bundleno = 6 (0x6), region = 85 }
 0x293   :  { %412 = vsyncpa [#allocation3], 1 }
 0x294   :  { %414 = vsyncpa [#allocation3 + $0x1], 1 }
 0x295   :  { %415 = vsyncpa [#allocation6], 1 }
 0x296   :  { %416 = vsyncpa [#allocation4], 1 }
 0x297   :  { %418 = vsyncpa [#allocation4 + $0x1], 1 }

</bundles_post_ra>
